<compile_context>
chip_gen: v5e
topology: v5e:2x2
jax: 0.10.0
libtpu: 0.0.40
codegen_flags: <defaults>
</compile_context>

<pallas_src>
import functools

import jax
import jax.numpy as jnp
from jax.experimental import pallas as pl
from jax.experimental.pallas import tpu as pltpu

LANES = 128
MAX_BLOCK_ROWS = 4096    # (4096, 128) f32 = 2 MiB per input buffer
NSPLIT_MIN_ROWS = 512    # engage the 2-way megacore split above this
NUM_SUMS = 3             # A=sum(t), C=sum(sigmoid(x)), B=sum(t*sigmoid(x))


def _round_up(x: int, m: int) -> int:
    return ((x + m - 1) // m) * m


def _cdiv(a: int, b: int) -> int:
    return -(-a // b)


def _choose_tiling(rows: int):
    """Pick (nsplit, blocks_per_split, block_rows).

    Invariant: nsplit * blocks_per_split == cdiv(rows, block_rows), so every
    grid block starts inside the array and only the final block may be a
    ragged (partial-DMA) read.  nsplit=1 always satisfies the check, so the
    loop always returns.
    """
    for nsplit in ((2, 1) if rows > NSPLIT_MIN_ROWS else (1,)):
        per_core = _cdiv(rows, nsplit)
        if per_core <= MAX_BLOCK_ROWS:
            block_rows = _round_up(per_core, 8)
            bps = 1
        else:
            block_rows = MAX_BLOCK_ROWS
            bps = _cdiv(per_core, MAX_BLOCK_ROWS)
        if nsplit * bps == _cdiv(rows, block_rows):
            return nsplit, bps, block_rows
    raise AssertionError("unreachable")


def _pu_sums_kernel(x_ref, t_ref, o_ref, *, n_valid, block_rows,
                    blocks_per_split, total_blocks, has_invalid_tail):
    """Accumulate 3 (8, 128) lane/sublane-partial sums per core slab.

    o_ref block is (1, 3, 8, 128), VMEM-resident across the inner (arbitrary)
    grid axis:
      slab 0: A = sum(target)
      slab 1: C = sum(sigmoid(output))
      slab 2: B = sum(target * sigmoid(output))
    The final cross-sublane/lane reduction and the PU-loss algebra happen in
    the JAX glue.
    """
    c = pl.program_id(0)   # core split (parallel)
    i = pl.program_id(1)   # row-block within this core's range (arbitrary)

    @pl.when(i == 0)
    def _init():
        o_ref[...] = jnp.zeros_like(o_ref)

    x = x_ref[...].astype(jnp.float32)
    t = t_ref[...].astype(jnp.float32)
    # One EUP transcendental per element; positive_loss = 1 - sigmoid is
    # recovered algebraically in the glue.
    sig = jax.nn.sigmoid(x)

    def accumulate(t_v, s_v):
        def acc(q, v):
            # (block_rows, 128) -> (block_rows//8, 8, 128); summing the
            # leading axis is plain elementwise vreg adds into the resident
            # accumulator slab (no per-step XLU reduction).
            o_ref[0, q] += jnp.sum(
                v.reshape(block_rows // 8, 8, LANES), axis=0)
        acc(0, t_v)          # A
        acc(1, s_v)          # C
        acc(2, t_v * s_v)    # B

    if not has_invalid_tail:
        # Fully block/lane-aligned input: no mask code emitted at all.
        accumulate(t, sig)
    else:
        blk = c * blocks_per_split + i
        is_tail = blk == (total_blocks - 1)

        @pl.when(jnp.logical_not(is_tail))
        def _bulk():
            accumulate(t, sig)

        @pl.when(is_tail)
        def _tail():
            # Only the final block can contain invalid data: the <128-element
            # zero pad (real zeros in HBM; would add 0.5/elem to C) and/or
            # out-of-bounds sublanes of a ragged partial-DMA block (garbage).
            # jnp.where is a select, so NaN/Inf garbage cannot poison the
            # sums (unlike multiply-by-mask).  int32 flat index: n < 2**31.
            row = jax.lax.broadcasted_iota(jnp.int32, (block_rows, LANES), 0)
            lane = jax.lax.broadcasted_iota(jnp.int32, (block_rows, LANES), 1)
            flat = (blk * block_rows + row) * LANES + lane
            valid = flat < n_valid
            accumulate(jnp.where(valid, t, 0.0), jnp.where(valid, sig, 0.0))


@functools.partial(jax.jit, static_argnames=("alpha", "use_abs"))
def pu_loss(output, target, *, alpha: float, use_abs: bool):
    """Pallas implementation of PULoss.forward (sigmoid PU instantiation)."""
    x = output.reshape(-1)
    t = target.reshape(-1)
    n = x.shape[0]
    assert n < 2 ** 31, "int32 in-kernel indexing requires n < 2**31"

    rows = _cdiv(n, LANES)
    nsplit, bps, block_rows = _choose_tiling(rows)
    total_blocks = nsplit * bps
    covered = total_blocks * block_rows * LANES   # elements the grid touches
    has_invalid_tail = covered != n

    # Rows that must physically exist in HBM.  Multi-block: the final block is
    # a ragged partial read, so only lane alignment (n % 128) may force a
    # (<128-element) pad.  Single block: pad the (small, <=2 MiB) array up to
    # the block so the block never exceeds the array.
    hbm_rows = block_rows if total_blocks == 1 else rows
    n_hbm = hbm_rows * LANES
    if n_hbm != n:
        # TODO(synk): a fully pad-free path for lane-unaligned inputs would
        # need a manual-DMA 1-D tail handler; this copy is the only one left.
        x = jnp.pad(x, (0, n_hbm - n))
        t = jnp.pad(t, (0, n_hbm - n))
    xp = x.reshape(hbm_rows, LANES)
    tp = t.reshape(hbm_rows, LANES)

    grid = (nsplit, bps)
    in_spec = pl.BlockSpec((block_rows, LANES), lambda c, i: (c * bps + i, 0))
    out_spec = pl.BlockSpec((1, NUM_SUMS, 8, LANES), lambda c, i: (c, 0, 0, 0))

    cost = pl.CostEstimate(
        flops=6 * n_hbm,
        transcendentals=n_hbm,
        bytes_accessed=n_hbm * (xp.dtype.itemsize + tp.dtype.itemsize)
        + nsplit * NUM_SUMS * 8 * LANES * 4,
    )

    kernel = functools.partial(
        _pu_sums_kernel,
        n_valid=n,
        block_rows=block_rows,
        blocks_per_split=bps,
        total_blocks=total_blocks,
        has_invalid_tail=has_invalid_tail,
    )

    sums = pl.pallas_call(
        kernel,
        out_shape=jax.ShapeDtypeStruct((nsplit, NUM_SUMS, 8, LANES),
                                       jnp.float32),
        grid_spec=pltpu.PrefetchScalarGridSpec(
            num_scalar_prefetch=0,
            grid=grid,
            in_specs=[in_spec, in_spec],
            out_specs=out_spec,
        ),
        compiler_params=pltpu.CompilerParams(
            dimension_semantics=("parallel", "arbitrary"),
        ),
        cost_estimate=cost,
    )(xp, tp)

    totals = jnp.sum(sums, axis=(0, 2, 3))  # (3,)
    a = totals[0]        # sum(positive) = sum(t)
    c_sum = totals[1]    # sum(sigmoid(x))
    b = totals[2]        # sum(t * sigmoid(x))

    n_positive = jnp.maximum(a, 1.0)                   # clamp_min(1)
    n_unlabeled = jnp.maximum(jnp.float32(n) - a, 1.0)  # clamp_min(1)

    # y_positive = 1 - sigmoid(x):
    #   sum(pos*y_pos) = a - b; sum(unl*y_unl) = c_sum - b; sum(pos*y_unl) = b
    positive_risk = alpha * (a - b) / n_positive
    negative_risk = (c_sum - b) / n_unlabeled - alpha * b / n_positive

    if use_abs:
        return positive_risk + jnp.abs(negative_risk)
    return jnp.where(
        negative_risk < 0.0, -negative_risk, positive_risk + negative_risk
    )


def _pu_loss_ref(output, target, *, alpha: float, use_abs: bool):
    """Pure-JAX reference mirroring the PyTorch forward exactly."""
    positive = target.astype(jnp.float32)
    unlabeled = 1.0 - positive
    n_positive = jnp.maximum(jnp.sum(positive), 1.0)
    n_unlabeled = jnp.maximum(jnp.sum(unlabeled), 1.0)
    y_positive = jax.nn.sigmoid(-output.astype(jnp.float32))
    y_unlabeled = jax.nn.sigmoid(output.astype(jnp.float32))
    positive_risk = jnp.sum(alpha * positive * y_positive / n_positive)
    negative_risk = jnp.sum(
        (unlabeled / n_unlabeled - alpha * positive / n_positive) * y_unlabeled
    )
    if use_abs:
        return positive_risk + jnp.abs(negative_risk)
    return jnp.where(
        negative_risk < 0.0, -negative_risk, positive_risk + negative_risk
    )


if __name__ == "__main__":
    key = jax.random.PRNGKey(0)
    k1, k2, k3, k4, k5, k6 = jax.random.split(key, 6)

    # Test 1: (2, 4, 16, 16) = 2048 elements — fully aligned: no pad, no mask.
    out1 = jax.random.normal(k1, (2, 4, 16, 16), dtype=jnp.float32)
    tgt1 = (jax.random.uniform(k2, (2, 4, 16, 16)) < 0.3).astype(jnp.float32)
    loss1 = jax.block_until_ready(pu_loss(out1, tgt1, alpha=0.3, use_abs=True))
    ref1 = _pu_loss_ref(out1, tgt1, alpha=0.3, use_abs=True)
    assert jnp.allclose(loss1, ref1, rtol=1e-5, atol=1e-5), (loss1, ref1)

    # Test 2: (3, 5, 7) = 105 elements — lane-unaligned tiny input: exercises
    # the single-block zero-pad + in-kernel where-mask path and the non-abs
    # branch.
    out2 = jax.random.normal(k3, (3, 5, 7), dtype=jnp.float32)
    tgt2 = (jax.random.uniform(k4, (3, 5, 7)) < 0.4).astype(jnp.float32)
    loss2 = jax.block_until_ready(pu_loss(out2, tgt2, alpha=0.25,
                                          use_abs=False))
    ref2 = _pu_loss_ref(out2, tgt2, alpha=0.25, use_abs=False)
    assert jnp.allclose(loss2, ref2, rtol=1e-5, atol=1e-5), (loss2, ref2)

    # Test 3: (21, 25, 128) = 67200 elements (525 rows) — exercises the 2-way
    # megacore split plus a ragged (partial-DMA) final block masked in-kernel,
    # with zero wrapper-side padding.
    out3 = jax.random.normal(k5, (21, 25, 128), dtype=jnp.float32)
    tgt3 = (jax.random.uniform(k6, (21, 25, 128)) < 0.2).astype(jnp.float32)
    loss3 = jax.block_until_ready(pu_loss(out3, tgt3, alpha=0.35,
                                          use_abs=True))
    ref3 = _pu_loss_ref(out3, tgt3, alpha=0.35, use_abs=True)
    assert jnp.allclose(loss3, ref3, rtol=1e-5, atol=1e-5), (loss3, ref3)

    print("KERNEL_OK")
</pallas_src>

<mosaic_0001>
module attributes {stable_mosaic.version = 11 : i64} {
  func.func @_pu_sums_kernel(%arg0: i32, %arg1: i32, %arg2: memref<16x128xf32, #tpu.memory_space<vmem>>, %arg3: memref<16x128xf32, #tpu.memory_space<vmem>>, %arg4: memref<1x3x8x128xf32, #tpu.memory_space<vmem>>) attributes {dimension_semantics = [#tpu.dimension_semantics<parallel>, #tpu.dimension_semantics<arbitrary>], iteration_bounds = array<i64: 1, 1>, scalar_prefetch = 0 : i64, scratch_operands = 0 : i64, tpu.core_type = #tpu.core_type<tc>, window_params = [{transform_indices = @transform_0, window_bounds = array<i64: 16, 128>}, {transform_indices = @transform_1, window_bounds = array<i64: 16, 128>}, {transform_indices = @transform_2, window_bounds = array<i64: 1, 3, 8, 128>}]} {
    %c0_i32 = arith.constant 0 : i32
    %0 = arith.cmpi eq, %arg1, %c0_i32 : i32
    %1 = arith.extui %0 : i1 to i32
    %c0_i32_0 = arith.constant 0 : i32
    %2 = arith.cmpi ne, %1, %c0_i32_0 : i32
    scf.if %2 {
      %cst_29 = arith.constant 0.000000e+00 : f32
      %35 = vector.broadcast %cst_29 : f32 to vector<1x3x8x128xf32>
      %c0_30 = arith.constant 0 : index
      %c0_31 = arith.constant 0 : index
      %c0_32 = arith.constant 0 : index
      %c0_33 = arith.constant 0 : index
      %36 = vector.load %arg4[%c0_30, %c0_31, %c0_32, %c0_33] : memref<1x3x8x128xf32, #tpu.memory_space<vmem>>, vector<1x3x8x128xf32>
      tpu.vector_store %arg4[%c0_30, %c0_31, %c0_32, %c0_33], %35 {strides = array<i32>} : memref<1x3x8x128xf32, #tpu.memory_space<vmem>>, vector<1x3x8x128xf32>,
    } else {
    }
    %c0 = arith.constant 0 : index
    %c0_1 = arith.constant 0 : index
    %3 = vector.load %arg2[%c0, %c0_1] : memref<16x128xf32, #tpu.memory_space<vmem>>, vector<16x128xf32>
    %c0_2 = arith.constant 0 : index
    %c0_3 = arith.constant 0 : index
    %4 = vector.load %arg3[%c0_2, %c0_3] : memref<16x128xf32, #tpu.memory_space<vmem>>, vector<16x128xf32>
    %5 = arith.negf %3 : vector<16x128xf32>
    %6 = math.exp %5 : vector<16x128xf32>
    %cst = arith.constant 1.000000e+00 : f32
    %7 = vector.broadcast %cst : f32 to vector<16x128xf32>
    %8 = arith.addf %7, %6 : vector<16x128xf32>
    %9 = arith.divf %7, %8 : vector<16x128xf32>
    %c0_4 = arith.constant 0 : index
    %c0_5 = arith.constant 0 : index
    %c0_6 = arith.constant 0 : index
    %c0_7 = arith.constant 0 : index
    %10 = vector.load %arg4[%c0_4, %c0_5, %c0_6, %c0_7] : memref<1x3x8x128xf32, #tpu.memory_space<vmem>>, vector<1x1x8x128xf32>
    %11 = vector.shape_cast %10 : vector<1x1x8x128xf32> to vector<8x128xf32>
    %12 = vector.shape_cast %4 : vector<16x128xf32> to vector<2x8x128xf32>
    %cst_8 = arith.constant dense<0.000000e+00> : vector<8x128xf32>
    %13 = vector.multi_reduction <add>, %12, %cst_8 [0] : vector<2x8x128xf32> to vector<8x128xf32>
    %14 = arith.addf %11, %13 : vector<8x128xf32>
    %c0_9 = arith.constant 0 : index
    %c0_10 = arith.constant 0 : index
    %c0_11 = arith.constant 0 : index
    %c0_12 = arith.constant 0 : index
    %15 = vector.load %arg4[%c0_9, %c0_10, %c0_11, %c0_12] : memref<1x3x8x128xf32, #tpu.memory_space<vmem>>, vector<1x1x8x128xf32>
    %16 = vector.shape_cast %15 : vector<1x1x8x128xf32> to vector<8x128xf32>
    %17 = vector.shape_cast %14 : vector<8x128xf32> to vector<1x1x8x128xf32>
    tpu.vector_store %arg4[%c0_9, %c0_10, %c0_11, %c0_12], %17 {strides = array<i32>} : memref<1x3x8x128xf32, #tpu.memory_space<vmem>>, vector<1x1x8x128xf32>,
    %c0_13 = arith.constant 0 : index
    %c1 = arith.constant 1 : index
    %c0_14 = arith.constant 0 : index
    %c0_15 = arith.constant 0 : index
    %18 = vector.load %arg4[%c0_13, %c1, %c0_14, %c0_15] : memref<1x3x8x128xf32, #tpu.memory_space<vmem>>, vector<1x1x8x128xf32>
    %19 = vector.shape_cast %18 : vector<1x1x8x128xf32> to vector<8x128xf32>
    %20 = vector.shape_cast %9 : vector<16x128xf32> to vector<2x8x128xf32>
    %cst_16 = arith.constant dense<0.000000e+00> : vector<8x128xf32>
    %21 = vector.multi_reduction <add>, %20, %cst_16 [0] : vector<2x8x128xf32> to vector<8x128xf32>
    %22 = arith.addf %19, %21 : vector<8x128xf32>
    %c0_17 = arith.constant 0 : index
    %c1_18 = arith.constant 1 : index
    %c0_19 = arith.constant 0 : index
    %c0_20 = arith.constant 0 : index
    %23 = vector.load %arg4[%c0_17, %c1_18, %c0_19, %c0_20] : memref<1x3x8x128xf32, #tpu.memory_space<vmem>>, vector<1x1x8x128xf32>
    %24 = vector.shape_cast %23 : vector<1x1x8x128xf32> to vector<8x128xf32>
    %25 = vector.shape_cast %22 : vector<8x128xf32> to vector<1x1x8x128xf32>
    tpu.vector_store %arg4[%c0_17, %c1_18, %c0_19, %c0_20], %25 {strides = array<i32>} : memref<1x3x8x128xf32, #tpu.memory_space<vmem>>, vector<1x1x8x128xf32>,
    %26 = arith.mulf %4, %9 : vector<16x128xf32>
    %c0_21 = arith.constant 0 : index
    %c2 = arith.constant 2 : index
    %c0_22 = arith.constant 0 : index
    %c0_23 = arith.constant 0 : index
    %27 = vector.load %arg4[%c0_21, %c2, %c0_22, %c0_23] : memref<1x3x8x128xf32, #tpu.memory_space<vmem>>, vector<1x1x8x128xf32>
    %28 = vector.shape_cast %27 : vector<1x1x8x128xf32> to vector<8x128xf32>
    %29 = vector.shape_cast %26 : vector<16x128xf32> to vector<2x8x128xf32>
    %cst_24 = arith.constant dense<0.000000e+00> : vector<8x128xf32>
    %30 = vector.multi_reduction <add>, %29, %cst_24 [0] : vector<2x8x128xf32> to vector<8x128xf32>
    %31 = arith.addf %28, %30 : vector<8x128xf32>
    %c0_25 = arith.constant 0 : index
    %c2_26 = arith.constant 2 : index
    %c0_27 = arith.constant 0 : index
    %c0_28 = arith.constant 0 : index
    %32 = vector.load %arg4[%c0_25, %c2_26, %c0_27, %c0_28] : memref<1x3x8x128xf32, #tpu.memory_space<vmem>>, vector<1x1x8x128xf32>
    %33 = vector.shape_cast %32 : vector<1x1x8x128xf32> to vector<8x128xf32>
    %34 = vector.shape_cast %31 : vector<8x128xf32> to vector<1x1x8x128xf32>
    tpu.vector_store %arg4[%c0_25, %c2_26, %c0_27, %c0_28], %34 {strides = array<i32>} : memref<1x3x8x128xf32, #tpu.memory_space<vmem>>, vector<1x1x8x128xf32>,
    return
  }
  func.func @transform_0(%arg0: i32, %arg1: i32) -> (i32, i32) {
    %c1_i32 = arith.constant 1 : i32
    %0 = arith.muli %arg0, %c1_i32 : i32
    %1 = arith.addi %0, %arg1 : i32
    %c0_i32 = arith.constant 0 : i32
    %c0_i32_0 = arith.constant 0 : i32
    return %1, %c0_i32 : i32, i32
  }
  func.func @transform_1(%arg0: i32, %arg1: i32) -> (i32, i32) {
    %c1_i32 = arith.constant 1 : i32
    %0 = arith.muli %arg0, %c1_i32 : i32
    %1 = arith.addi %0, %arg1 : i32
    %c0_i32 = arith.constant 0 : i32
    %c0_i32_0 = arith.constant 0 : i32
    return %1, %c0_i32 : i32, i32
  }
  func.func @transform_2(%arg0: i32, %arg1: i32) -> (i32, i32, i32, i32) {
    %c0_i32 = arith.constant 0 : i32
    %c0_i32_0 = arith.constant 0 : i32
    %c0_i32_1 = arith.constant 0 : i32
    %c0_i32_2 = arith.constant 0 : i32
    return %arg0, %c0_i32, %c0_i32_0, %c0_i32_1 : i32, i32, i32, i32
  }
}

</mosaic_0001>

<bundles_post_ra>
// kernel: pu_loss.1
= control target key start
LH: loop header
LB: loop body
LE: loop exit
PB: predicated region body
PF: predicated region fallthrough
CT: control target
= control target key end

     0   :  { %s187_s1 = inlined_call_operand.vmem [shape: f32[16,128], index: 1, kind: input, shape index: {}]   ;;  %s188_s0 = inlined_call_operand.vmem [shape: f32[16,128], index: 0, kind: input, shape index: {}]   ;;  %s189_s2 = inlined_call_operand.vmem [shape: f32[1,3,8,128], index: 2, kind: output, shape index: {}]  }
   0x1   :  { %v64_v0 = vld [vmem:[%s187_s1] sm:$0xff]  ;;  %v65_v1 = vld [vmem:[%s187_s1 + $0x8] sm:$0xff] }
   0x2   :  { %v62_v2 = vld [vmem:[%s188_s0] sm:$0xff]  ;;  %v105_v3 = vadd.f32 %v65_v1, %v64_v0  ;;  %v63_v4 = vld [vmem:[%s188_s0 + $0x8] sm:$0xff] }
   0x3   :  { %v136_v5 = vmul.f32 -1.442695, %v62_v2  ;;  %v137_v6 = vmul.f32 -1.442695, %v63_v4 }
   0x4   :  { %107 = vst [vmem:[%s189_s2] sm:$0xff] %v105_v3 }
   0x5   :  { %143 = vpow2.f32 %v136_v5 }
   0x6   :  { %145 = vpow2.f32 %v137_v6 }
   0xb   :  { %v144_v7 = vpop.eup %143 }
   0xc   :  { %v146_v8 = vpop.eup %145  ;;  %v72_v9 = vadd.f32 1.0, %v144_v7 }
   0xd   :  { %v73_v10 = vadd.f32 1.0, %v146_v8 }
   0xe   :  { %147 = vrcp.f32 %v72_v9  ;;  %vm79_vm0 = vweird.f32 %v72_v9  ;;  %v85_v14 = vand.u32 2147483648, %v72_v9  ;;  %v83_v17 = vand.u32 2147483647, %v72_v9 }
   0xf   :  { %149 = vrcp.f32 %v73_v10  ;;  %v100_v18 = vand.u32 2147483648, %v73_v10  ;;  %vm94_vm2 = vweird.f32 %v73_v10  ;;  %v98_v20 = vand.u32 2147483647, %v73_v10 }
  0x10   :  { %v86_v22 = vor.u32 1.1754944e-38, %v85_v14  ;;  %vm84_vm5 = vcmp.eq.f32.partialorder %v83_v17, 8.507059e+37 }
  0x11   :  { %v101_v25 = vor.u32 1.1754944e-38, %v100_v18  ;;  %vm99_vm7 = vcmp.eq.f32.partialorder %v98_v20, 8.507059e+37 }
  0x14   :  { %v148_v11 = vpop.eup %147 }
  0x15   :  { %v150_v12 = vpop.eup %149  ;;  %v75_v13 = vmul.f32 %v148_v11, %v72_v9  ;;  %vm80_vm1 = vweird.f32 %v148_v11 }
  0x16   :  { %v90_v15 = vmul.f32 %v150_v12, %v73_v10  ;;  %vm95_vm3 = vweird.f32 %v150_v12  ;;  %vm81_vm4 = vmor %vm79_vm0, %vm80_vm1 }
  0x17   :  { %v76_v16 = vsub.f32 1.0, %v75_v13  ;;  %vm96_vm6 = vmor %vm94_vm2, %vm95_vm3 }
  0x18   :  { %v91_v19 = vsub.f32 1.0, %v90_v15 }
  0x19   :  { %v77_v21 = vmul.f32 %v148_v11, %v76_v16 }
  0x1a   :  { %v92_v23 = vmul.f32 %v150_v12, %v91_v19 }
  0x1b   :  { %v78_v24 = vadd.f32 %v148_v11, %v77_v21 }
  0x1c   :  { %v93_v26 = vadd.f32 %v150_v12, %v92_v23 }
  0x1d   :  { %v82_v27 = vsel %vm81_vm4, %v148_v11, %v78_v24 }
  0x1e   :  { %v87_v28 = vsel %vm84_vm5, %v86_v22, %v82_v27  ;;  %v97_v29 = vsel %vm96_vm6, %v150_v12, %v93_v26 }
  0x1f   :  { %v102_v30 = vsel %vm99_vm7, %v101_v25, %v97_v29  ;;  %v113_v31 = vmul.f32 %v87_v28, %v64_v0 }
  0x20   :  { %v110_v32 = vadd.f32 %v102_v30, %v87_v28  ;;  %v114_v33 = vmul.f32 %v102_v30, %v65_v1 }
  0x22   :  { %v117_v34 = vadd.f32 %v114_v33, %v113_v31  ;;  %139 = vst [vmem:[%s189_s2 + $0x8] sm:$0xff] %v110_v32 }
  0x24   :  { %141 = vst [vmem:[%s189_s2 + $0x10] sm:$0xff] %v117_v34 }

</bundles_post_ra>
